<compile_context>
chip_gen: v5e
topology: v5e:2x2
jax: 0.10.0
libtpu: 0.0.40
codegen_flags: <defaults>
</compile_context>

<pallas_src>
import jax
import jax.numpy as jnp
from jax.experimental import pallas as pl
from jax.experimental.pallas import tpu as pltpu  # noqa: F401  (TPU backend)

CIN = 3
COUT = 8


def _conv1x1_hardsigmoid_kernel(x_ref, w_ref, b_ref, o_ref):
    # x_ref: (N, CIN, HW)   w_ref: (COUT, CIN)   b_ref: (COUT, 1)
    # o_ref: (N, COUT, HW)  -- HW is a multiple of 128 -> unmasked stores.
    x = x_ref[...]          # (N, 3, HW)  lane-major spatial
    w = w_ref[...]          # (8, 3)      already divided by 6
    b = b_ref[...]          # (8, 1)      already (bias + 3) / 6
    # VPU channel contraction: lane-broadcast weights x sublane-broadcast rows.
    acc = (w[None, :, 0:1] * x[:, 0:1, :]
           + w[None, :, 1:2] * x[:, 1:2, :]
           + w[None, :, 2:3] * x[:, 2:3, :]
           + b[None, :, :])
    # hardsigmoid with constants folded: relu6(conv+3)/6 == clamp(acc, 0, 1)
    o_ref[...] = jnp.clip(acc, 0.0, 1.0).astype(o_ref.dtype)


def conv1x1_pad1_hardsigmoid(x_nchw, weight, bias):
    """x_nchw: (N, 3, H, W); weight: (8, 3) or (8, 3, 1, 1); bias: (8,)."""
    N, C, H, W = x_nchw.shape
    assert C == CIN
    Hp, Wp = H + 2, W + 2
    HW = H * W

    weight = jnp.asarray(weight, jnp.float32).reshape(COUT, CIN)
    bias = jnp.asarray(bias, jnp.float32).reshape(COUT)

    # NCHW already has spatial minor -> free reshape, no transpose, no pad pass.
    x_cm = x_nchw.astype(jnp.float32).reshape(N, CIN, HW)

    # Fold the hardsigmoid affine into the parameters.
    w_f = weight / 6.0                 # (COUT, CIN)
    b_f = (bias + 3.0) / 6.0           # (COUT,)

    # Single grid step: whole batch as one block (all lane-aligned in VMEM).
    interior = pl.pallas_call(
        _conv1x1_hardsigmoid_kernel,
        out_shape=jax.ShapeDtypeStruct((N, COUT, HW), jnp.float32),
        in_specs=[
            pl.BlockSpec((N, CIN, HW), lambda: (0, 0, 0)),
            pl.BlockSpec((COUT, CIN), lambda: (0, 0)),
            pl.BlockSpec((COUT, 1), lambda: (0, 0)),
        ],
        out_specs=pl.BlockSpec((N, COUT, HW), lambda: (0, 0, 0)),
    )(x_cm, w_f, b_f.reshape(COUT, 1))

    # padding=1 on a 1x1 conv: border pixels see zero input, so the output
    # border is clamp((bias+3)/6, 0, 1) = hardsigmoid(bias) per channel.
    border = jnp.clip(b_f, 0.0, 1.0)                                   # (COUT,)
    full = jnp.broadcast_to(border[None, :, None, None], (N, COUT, Hp, Wp))
    full = full.at[:, :, 1:-1, 1:-1].set(interior.reshape(N, COUT, H, W))
    # TODO(synk): optionally emit bf16 output (halves write bytes) behind a flag.
    return full


def _reference(x_nchw, weight, bias):
    # Pure-JAX reference mirroring PyTorch: relu6(conv2d(x, pad=1) + 3) / 6.
    w2 = jnp.asarray(weight, jnp.float32).reshape(COUT, CIN)
    b1 = jnp.asarray(bias, jnp.float32).reshape(COUT)
    x_pad = jnp.pad(x_nchw, ((0, 0), (0, 0), (1, 1), (1, 1)))
    v1 = jnp.einsum("nchw,oc->nohw", x_pad, w2) + b1[None, :, None, None]
    return jnp.clip(v1 + 3.0, 0.0, 6.0) / 6.0


if __name__ == "__main__":
    key = jax.random.PRNGKey(0)
    kx, kw, kb = jax.random.split(key, 3)

    # Small shapes consistent with the module: N=2, C=3, H=W=16.
    x = jax.random.normal(kx, (2, CIN, 16, 16), dtype=jnp.float32)
    # PyTorch Conv2d(3, 8, 1) parameter shapes: weight (8, 3, 1, 1), bias (8,).
    weight = jax.random.normal(kw, (COUT, CIN, 1, 1), dtype=jnp.float32) * 0.1
    bias = jax.random.normal(kb, (COUT,), dtype=jnp.float32) * 0.1

    out = conv1x1_pad1_hardsigmoid(x, weight, bias)
    out = jax.block_until_ready(out)

    ref = _reference(x, weight, bias)
    assert out.shape == (2, COUT, 18, 18), out.shape
    assert jnp.allclose(out, ref, atol=1e-5, rtol=1e-5), "mismatch vs reference"

    print("KERNEL_OK")
</pallas_src>

<mosaic_0001>
module attributes {stable_mosaic.version = 11 : i64} {
  func.func @_conv1x1_hardsigmoid_kernel(%arg0: memref<2x3x256xf32, #tpu.memory_space<vmem>>, %arg1: memref<8x3xf32, #tpu.memory_space<vmem>>, %arg2: memref<8x1xf32, #tpu.memory_space<vmem>>, %arg3: memref<2x8x256xf32, #tpu.memory_space<vmem>>) attributes {dimension_semantics = [], scalar_prefetch = 0 : i64, scratch_operands = 0 : i64, tpu.core_type = #tpu.core_type<tc>} {
    %c0 = arith.constant 0 : index
    %c0_0 = arith.constant 0 : index
    %c0_1 = arith.constant 0 : index
    %0 = vector.load %arg0[%c0, %c0_0, %c0_1] : memref<2x3x256xf32, #tpu.memory_space<vmem>>, vector<2x3x256xf32>
    %c0_2 = arith.constant 0 : index
    %c0_3 = arith.constant 0 : index
    %1 = vector.load %arg1[%c0_2, %c0_3] : memref<8x3xf32, #tpu.memory_space<vmem>>, vector<8x3xf32>
    %c0_4 = arith.constant 0 : index
    %c0_5 = arith.constant 0 : index
    %2 = vector.load %arg2[%c0_4, %c0_5] : memref<8x1xf32, #tpu.memory_space<vmem>>, vector<8x1xf32>
    %3 = vector.extract_strided_slice %1 {offsets = [0, 0], sizes = [8, 1], strides = [1, 1]} : vector<8x3xf32> to vector<8x1xf32>
    %4 = vector.shape_cast %3 : vector<8x1xf32> to vector<1x8x1xf32>
    %5 = vector.extract_strided_slice %0 {offsets = [0, 0, 0], sizes = [2, 1, 256], strides = [1, 1, 1]} : vector<2x3x256xf32> to vector<2x1x256xf32>
    %6 = vector.broadcast %4 : vector<1x8x1xf32> to vector<2x8x256xf32>
    %7 = vector.broadcast %5 : vector<2x1x256xf32> to vector<2x8x256xf32>
    %8 = arith.mulf %6, %7 : vector<2x8x256xf32>
    %9 = vector.extract_strided_slice %1 {offsets = [0, 1], sizes = [8, 1], strides = [1, 1]} : vector<8x3xf32> to vector<8x1xf32>
    %10 = vector.shape_cast %9 : vector<8x1xf32> to vector<1x8x1xf32>
    %11 = vector.extract_strided_slice %0 {offsets = [0, 1, 0], sizes = [2, 1, 256], strides = [1, 1, 1]} : vector<2x3x256xf32> to vector<2x1x256xf32>
    %12 = vector.broadcast %10 : vector<1x8x1xf32> to vector<2x8x256xf32>
    %13 = vector.broadcast %11 : vector<2x1x256xf32> to vector<2x8x256xf32>
    %14 = arith.mulf %12, %13 : vector<2x8x256xf32>
    %15 = arith.addf %8, %14 : vector<2x8x256xf32>
    %16 = vector.extract_strided_slice %1 {offsets = [0, 2], sizes = [8, 1], strides = [1, 1]} : vector<8x3xf32> to vector<8x1xf32>
    %17 = vector.shape_cast %16 : vector<8x1xf32> to vector<1x8x1xf32>
    %18 = vector.extract_strided_slice %0 {offsets = [0, 2, 0], sizes = [2, 1, 256], strides = [1, 1, 1]} : vector<2x3x256xf32> to vector<2x1x256xf32>
    %19 = vector.broadcast %17 : vector<1x8x1xf32> to vector<2x8x256xf32>
    %20 = vector.broadcast %18 : vector<2x1x256xf32> to vector<2x8x256xf32>
    %21 = arith.mulf %19, %20 : vector<2x8x256xf32>
    %22 = arith.addf %15, %21 : vector<2x8x256xf32>
    %23 = vector.shape_cast %2 : vector<8x1xf32> to vector<1x8x1xf32>
    %24 = vector.broadcast %23 : vector<1x8x1xf32> to vector<2x8x256xf32>
    %25 = arith.addf %22, %24 : vector<2x8x256xf32>
    %cst = arith.constant 0.000000e+00 : f32
    %cst_6 = arith.constant 1.000000e+00 : f32
    %26 = vector.broadcast %cst : f32 to vector<2x8x256xf32>
    %27 = arith.maximumf %26, %25 : vector<2x8x256xf32>
    %28 = vector.broadcast %cst_6 : f32 to vector<2x8x256xf32>
    %29 = arith.minimumf %28, %27 : vector<2x8x256xf32>
    %c0_7 = arith.constant 0 : index
    %c0_8 = arith.constant 0 : index
    %c0_9 = arith.constant 0 : index
    %30 = vector.load %arg3[%c0_7, %c0_8, %c0_9] : memref<2x8x256xf32, #tpu.memory_space<vmem>>, vector<2x8x256xf32>
    tpu.vector_store %arg3[%c0_7, %c0_8, %c0_9], %29 {strides = array<i32>} : memref<2x8x256xf32, #tpu.memory_space<vmem>>, vector<2x8x256xf32>,
    return
  }
}

</mosaic_0001>

<bundles_post_ra>
// kernel: tpu_custom_call.1
= control target key start
LH: loop header
LB: loop body
LE: loop exit
PB: predicated region body
PF: predicated region fallthrough
CT: control target
= control target key end

     0   :  { %v166_v1 = vmov 0   ;;  %v167_v2 = vmov 2   ;;  %s207_s0 = inlined_call_operand.vmem [shape: f32[2,3,256], index: 0, kind: input, shape index: {}]   ;;  %s208_s1 = inlined_call_operand.vmem [shape: f32[8,3], index: 1, kind: input, shape index: {}]   ;;  %s209_s2 = inlined_call_operand.vmem [shape: f32[8,1], index: 2, kind: input, shape index: {}]   ;;  %s210_s3 = inlined_call_operand.hbm [shape: f32[2,8,256], index: 3, kind: output, shape index: {}]  }
   0x1   :  { %v17_v0 = vld [vmem:[%s208_s1] sm:$0xff]  ;;  %135 = vset.pattern.permute.xlu0 %v166_v1  ;;  %137 = vset.pattern.permute.xlu1 %v167_v2 }
   0x2   :  { %8 = vsyncpa [#allocation3], 0  ;;  %21 = vperm.xlu0 %135, %v17_v0   ;;  %67 = vperm.xlu1 %137, %v17_v0   ;;  %v18_v3 = vld [vmem:[%s209_s2] sm:$0xff]  ;;  %v168_v4 = vmov 1   ;;  %v16_v6 = vld [vmem:[%s207_s0 + $0x8] sm:$0x77] }
   0x3   :  { %v15_v5 = vld [vmem:[%s207_s0] sm:$0x77]  ;;  %v28_v10 = vperm.slane %v16_v6, 0  ;;  %v29_v11 = vperm.slane %v16_v6, 4  ;;  %v48_v14 = vperm.slane %v16_v6, 1  ;;  %v49_v15 = vperm.slane %v16_v6, 5 }
   0x4   :  { %v26_v8 = vperm.slane %v15_v5, 0  ;;  %v27_v9 = vperm.slane %v15_v5, 4  ;;  %v46_v12 = vperm.slane %v15_v5, 1  ;;  %v47_v13 = vperm.slane %v15_v5, 5  ;;  %s169_s0 = smov [#allocation2]   ;;  %s117_s21 = sshll.u32 %s210_s3, 4  ;;  %s118_s21 = int_to_ptr.hbm [resolvable:$true] %s117_s21 }
   0x5   :  { %v70_v17 = vperm.slane %v15_v5, 2  ;;  %v71_v18 = vperm.slane %v15_v5, 6  ;;  %v72_v19 = vperm.slane %v16_v6, 2  ;;  %v73_v20 = vperm.slane %v16_v6, 6  ;;  %s115_s2 = sshll.u32 %s169_s0, 4  ;;  %s170_s22 = smov 256   ;;  %s116_s2 = int_to_ptr.vmem [resolvable:$true] %s115_s2 }
   0x6   :  { %v34_v21 = vperm.slane %v26_v8, 0  ;;  %v35_v22 = vperm.slane %v27_v9, 0  ;;  %v36_v23 = vperm.slane %v28_v10, 0  ;;  %v37_v24 = vperm.slane %v29_v11, 0  ;;  %s171_s23 = smov 16  }
   0x7   :  { %v54_v25 = vperm.slane %v46_v12, 1  ;;  %v55_v26 = vperm.slane %v47_v13, 1  ;;  %v56_v27 = vperm.slane %v48_v14, 1  ;;  %v57_v28 = vperm.slane %v49_v15, 1 }
   0x8   :  { %v78_v29 = vperm.slane %v70_v17, 2  ;;  %v79_v30 = vperm.slane %v71_v18, 2  ;;  %v80_v31 = vperm.slane %v72_v19, 2  ;;  %v81_v32 = vperm.slane %v73_v20, 2 }
   0xa   :  { %136 = vset.pattern.permute.xlu0 %v168_v4  ;;  %138 = vset.pattern.permute.xlu1 %v166_v1 }
   0xb   :  { %43 = vperm.xlu0 %136, %v17_v0   ;;  %92 = vperm.xlu1 %138, %v18_v3  }
  0x13   :  { %139 = vset.pattern.permute.xlu0 %v166_v1 }
  0x74   :  { %v22_v7 = vpop.permute.xlu0 %21  ;;  %v68_v16 = vpop.permute.xlu1 %67 }
  0x75   :  { %v38_v33 = vmul.f32 %v34_v21, %v22_v7  ;;  %v39_v34 = vmul.f32 %v35_v22, %v22_v7  ;;  %v40_v35 = vmul.f32 %v36_v23, %v22_v7  ;;  %v41_v36 = vmul.f32 %v37_v24, %v22_v7 }
  0x76   :  { %v82_v42 = vmul.f32 %v78_v29, %v68_v16  ;;  %v83_v43 = vmul.f32 %v79_v30, %v68_v16  ;;  %v84_v44 = vmul.f32 %v80_v31, %v68_v16  ;;  %v85_v45 = vmul.f32 %v81_v32, %v68_v16 }
  0x7d   :  { %v44_v37 = vpop.permute.xlu0 %43  ;;  %v93_v50 = vpop.permute.xlu1 %92 }
  0x7e   :  { %v58_v38 = vmul.f32 %v54_v25, %v44_v37  ;;  %v59_v39 = vmul.f32 %v55_v26, %v44_v37  ;;  %v60_v40 = vmul.f32 %v56_v27, %v44_v37  ;;  %v61_v41 = vmul.f32 %v57_v28, %v44_v37 }
  0x80   :  { %v62_v46 = vadd.f32 %v58_v38, %v38_v33  ;;  %v63_v47 = vadd.f32 %v59_v39, %v39_v34  ;;  %v64_v48 = vadd.f32 %v60_v40, %v40_v35  ;;  %v65_v49 = vadd.f32 %v61_v41, %v41_v36 }
  0x82   :  { %v86_v51 = vadd.f32 %v82_v42, %v62_v46  ;;  %v87_v52 = vadd.f32 %v83_v43, %v63_v47  ;;  %v88_v53 = vadd.f32 %v84_v44, %v64_v48  ;;  %v89_v54 = vadd.f32 %v85_v45, %v65_v49 }
  0x84   :  { %v95_v55 = vadd.f32 %v93_v50, %v86_v51  ;;  %v96_v56 = vadd.f32 %v93_v50, %v87_v52  ;;  %v97_v57 = vadd.f32 %v93_v50, %v88_v53  ;;  %v98_v58 = vadd.f32 %v93_v50, %v89_v54 }
  0x86   :  { %v99_v59 = vmax.f32 %v95_v55, 0.0  ;;  %v100_v60 = vmax.f32 %v96_v56, 0.0  ;;  %v101_v61 = vmax.f32 %v97_v57, 0.0  ;;  %v102_v62 = vmax.f32 %v98_v58, 0.0 }
  0x88   :  { %v103_v63 = vmin.f32 %v99_v59, 1.0  ;;  %v104_v0 = vmin.f32 %v100_v60, 1.0  ;;  %v105_v1 = vmin.f32 %v101_v61, 1.0  ;;  %v106_v2 = vmin.f32 %v102_v62, 1.0 }
  0x8a   :  { %107 = vst [vmem:[#allocation2] sm:$0xff] %v103_v63 }
  0x8b   :  { %108 = vst [vmem:[#allocation2 + $0x8] sm:$0xff] %v104_v0 }
  0x8c   :  { %109 = vst [vmem:[#allocation2 + $0x10] sm:$0xff] %v105_v1 }
  0x8d   :  { %110 = vst [vmem:[#allocation2 + $0x18] sm:$0xff] %v106_v2 }
  0x8e   :  { %123 = dma.vmem_to_hbm [thread:$0]  %s116_s2, 512, %s118_s21, [#allocation3], %s170_s22, %s170_s22, %s171_s23  }
  0x8f   :  { %164 = dma.done.wait [#allocation3], 512  }
  0x90   :  { %165 = vsyncadd [#allocation3], 4294966784 }
  0x91   :  { %128 = vsyncpa [#allocation3], 1 }

</bundles_post_ra>
